<compile_context>
chip_gen: v5e
topology: v5e:2x2
jax: 0.10.0
libtpu: 0.0.40
codegen_flags: <defaults>
</compile_context>

<pallas_src>
import jax
import jax.numpy as jnp
from jax import lax
from jax.experimental import pallas as pl
from jax.experimental.pallas import tpu as pltpu


# --------------------------------------------------------------------------
# Kernels
# --------------------------------------------------------------------------
def _corr_kernel_mxu(x_ref, t_ref, o_ref):
    """MXU path (requires N % 8 == 0 so (Bb, N, S) -> (Bb*N, S) collapse is a
    sublane-tile-aligned layout no-op).

    x_ref: (Bb, S), t_ref: (Bb, N, S), o_ref: (Bb * N, 1).
    """
    x = x_ref[...].astype(jnp.float32)                       # (Bb, S)
    t = t_ref[...].astype(jnp.float32)                       # (Bb, N, S)
    bb, n, s = t.shape

    # Shared reduction weights: contracting against ones(S, 1) turns the three
    # S-axis sums into MXU matmuls (no XLU rotate trees).
    ones = jnp.ones((s, 1), dtype=jnp.float32)

    # corr_xx = sum_s x^2 -> (Bb, 1), then fold rsqrt into x so the per-batch
    # norm never needs broadcasting over the flattened (Bb*N) template rows.
    xx = jnp.dot(x * x, ones, precision=lax.Precision.HIGHEST,
                 preferred_element_type=jnp.float32)          # (Bb, 1)
    xn = x * lax.rsqrt(xx)                                    # (Bb, S)

    # Row-flattened product / squared-template slabs (layout no-op, N % 8 == 0).
    xt = (xn[:, None, :] * t).reshape(bb * n, s)              # (Bb*N, S)
    tt = (t * t).reshape(bb * n, s)                           # (Bb*N, S)

    num = jnp.dot(xt, ones, precision=lax.Precision.HIGHEST,
                  preferred_element_type=jnp.float32)         # (Bb*N, 1)
    den = jnp.dot(tt, ones, precision=lax.Precision.HIGHEST,
                  preferred_element_type=jnp.float32)         # (Bb*N, 1)

    # corr = (x.t) * rsqrt(x.x) * rsqrt(t.t); rsqrt runs on the EUP.
    # All-zero rows give non-finite values just like the reference's div-by-0.
    o_ref[...] = (num * lax.rsqrt(den)).astype(o_ref.dtype)


def _corr_kernel_vpu(x_ref, t_ref, o_ref):
    """Fallback (template count not aligned to the f32 sublane tile): the row
    collapse would force a relayout, so keep the lane-reduction formulation.

    x_ref: (Bb, S), t_ref: (Bb, N, S), o_ref: (Bb, N).
    """
    x = x_ref[...].astype(jnp.float32)                        # (Bb, S)
    t = t_ref[...].astype(jnp.float32)                        # (Bb, N, S)

    corr_xt = jnp.sum(x[:, None, :] * t, axis=-1)             # (Bb, N)
    corr_xx = jnp.sum(x * x, axis=-1, keepdims=True)          # (Bb, 1)
    corr_tt = jnp.sum(t * t, axis=-1)                         # (Bb, N)

    out = corr_xt * lax.rsqrt(corr_xx) * lax.rsqrt(corr_tt)
    o_ref[...] = out.astype(o_ref.dtype)


# --------------------------------------------------------------------------
# Block / VMEM sizing
# --------------------------------------------------------------------------
def _vmem_capacity_bytes():
    """Per-core VMEM capacity (128 MiB on v5e/v6e, 64 MiB on v7x)."""
    try:
        return int(pltpu.get_tpu_info().vmem_capacity_bytes)
    except Exception:
        return 64 * 1024 * 1024   # conservative fallback (smallest gen, v7x)


def _row_mult(dtype):
    """Packed sublane tile of a dtype: f32 -> 8 rows, bf16 -> 16, int8 -> 32."""
    return max(8, 32 // jnp.dtype(dtype).itemsize)


def _per_row_vmem_bytes(N, S, x_itemsize, t_itemsize, out_itemsize):
    """VMEM bytes needed per batch row inside one grid step."""
    # Double-buffered pipelined blocks (x, t, out) ...
    io = 2 * (S * x_itemsize + N * S * t_itemsize + N * out_itemsize)
    # ... plus f32 in-kernel temporaries: upcast t, the x*t and t*t slabs,
    # upcast/normalised x and the small per-row reduction outputs.
    tmp = (3 * N * S + 3 * S + 8 * N) * 4
    return io + tmp


def _pick_batch_block(B, N, S, x_dtype, t_dtype, out_dtype):
    row_mult = max(_row_mult(x_dtype), _row_mult(t_dtype), _row_mult(out_dtype))
    per_row = _per_row_vmem_bytes(N, S,
                                  jnp.dtype(x_dtype).itemsize,
                                  jnp.dtype(t_dtype).itemsize,
                                  jnp.dtype(out_dtype).itemsize)

    # Working-set budget: a fraction of this generation's VMEM (leaves the
    # rest for Mosaic-internal scratch and accounting slack).
    budget = (3 * _vmem_capacity_bytes()) // 8
    cap = max(row_mult, budget // max(per_row, 1))
    cap = (cap // row_mult) * row_mult

    # Keep at least two grid steps whenever the batch allows it so the
    # "parallel" batch axis can be sharded across both TensorCores on v7x;
    # the extra pipeline step is noise for this memory-bound kernel elsewhere.
    if B >= 2 * row_mult:
        cap = min(cap, row_mult * pl.cdiv(pl.cdiv(B, 2), row_mult))

    if B <= cap:
        return B          # full-dim block is always a legal block shape
    return int(cap)       # multiple of row_mult; trailing partial block is OK


def _vmem_limit_bytes(working_set_bytes):
    cap = _vmem_capacity_bytes()
    limit = max(32 * 1024 * 1024, working_set_bytes + 16 * 1024 * 1024)
    return int(min(cap - 4 * 1024 * 1024, limit))


# --------------------------------------------------------------------------
# Wrappers
# --------------------------------------------------------------------------
def corr_layer_m1(x, t, *, batch_block=None):
    """M == 1 correlation layer.  x: (B, S), t: (B, N, S) -> (B, N)."""
    B, S = x.shape
    Bt, N, St = t.shape
    assert B == Bt and S == St

    out_dtype = jnp.result_type(x.dtype, t.dtype)
    if batch_block is None:
        batch_block = _pick_batch_block(B, N, S, x.dtype, t.dtype, out_dtype)
    grid = (pl.cdiv(B, batch_block),)

    per_row = _per_row_vmem_bytes(N, S,
                                  jnp.dtype(x.dtype).itemsize,
                                  jnp.dtype(t.dtype).itemsize,
                                  jnp.dtype(out_dtype).itemsize)
    compiler_params = pltpu.CompilerParams(
        dimension_semantics=("parallel",),
        vmem_limit_bytes=_vmem_limit_bytes(batch_block * per_row),
    )

    in_specs = [
        pl.BlockSpec((batch_block, S), lambda b: (b, 0)),
        pl.BlockSpec((batch_block, N, S), lambda b: (b, 0, 0)),
    ]

    if N % 8 == 0:
        # MXU path: flat (B*N, 1) output block (reshaped to (B, N) outside the
        # kernel) so the matmul results never need an in-kernel relayout.
        # TODO(synk): output stays 1 lane wide (masked stores); a lane-dense
        # (N, batch) writeback only matters once B*N output traffic stops
        # being negligible (~1/S of the T read).
        out = pl.pallas_call(
            _corr_kernel_mxu,
            out_shape=jax.ShapeDtypeStruct((B * N, 1), out_dtype),
            grid_spec=pltpu.PrefetchScalarGridSpec(
                num_scalar_prefetch=0,
                grid=grid,
                in_specs=in_specs,
                out_specs=pl.BlockSpec((batch_block * N, 1), lambda b: (b, 0)),
            ),
            compiler_params=compiler_params,
        )(x, t)
        return out.reshape(B, N)

    # N not a multiple of the f32 sublane tile: lane-reduction fallback.
    return pl.pallas_call(
        _corr_kernel_vpu,
        out_shape=jax.ShapeDtypeStruct((B, N), out_dtype),
        grid_spec=pltpu.PrefetchScalarGridSpec(
            num_scalar_prefetch=0,
            grid=grid,
            in_specs=in_specs,
            out_specs=pl.BlockSpec((batch_block, N), lambda b: (b, 0)),
        ),
        compiler_params=compiler_params,
    )(x, t)


def corr_layer(X, T):
    """ConvCA-style _CorrLayer forward.

    X: (B, 1, 1, S)  signal branch output (M == 1 in ConvCA)
    T: (B, 1, N, S)  template branch output
    returns corr: (B, 1, 1, N)
    """
    B, c1, M, S = X.shape
    Bt, c2, N, St = T.shape
    assert B == Bt and c1 == 1 and c2 == 1 and St == S
    # TODO(synk): the generic module allows M > 1 signal rows; ConvCA always
    # uses M == 1, which is the only case implemented here.
    assert M == 1, "ConvCA _CorrLayer always sees a single signal row (M == 1)"
    out = corr_layer_m1(X.reshape(B, S), T.reshape(B, N, S))   # (B, N)
    return out.reshape(B, 1, 1, N)


# --------------------------------------------------------------------------
# Pure-JAX reference (mirror of the PyTorch module)
# --------------------------------------------------------------------------
def _reference(X, T):
    Tt = jnp.swapaxes(T, -1, -2)
    corr_xt = jnp.matmul(X, Tt, precision=lax.Precision.HIGHEST)
    corr_xx = jnp.sum(jnp.square(X), -1, keepdims=True)
    corr_tt = jnp.sum(jnp.square(Tt), -2, keepdims=True)
    return corr_xt / (jnp.sqrt(corr_xx) * jnp.sqrt(corr_tt))


if __name__ == "__main__":
    key = jax.random.PRNGKey(0)
    kx, kt = jax.random.split(key)

    # 1) ConvCA-like toy shapes (f32, MXU path): batch=2, n_samples=128, n_classes=8.
    B, S, N = 2, 128, 8
    X = jax.random.normal(kx, (B, 1, 1, S), dtype=jnp.float32)
    T = jax.random.normal(kt, (B, 1, N, S), dtype=jnp.float32)
    out = jax.block_until_ready(corr_layer(X, T))
    ref = _reference(X, T)
    assert out.shape == ref.shape, (out.shape, ref.shape)
    assert jnp.allclose(out, ref, atol=2e-5, rtol=2e-5), "f32 mismatch vs reference"

    # 2) Multi-step grid with a trailing partial block (B not a multiple of the
    #    forced block): exercises the padded-row / discarded-writeback path.
    B2, S2 = 20, 256
    X2 = jax.random.normal(kx, (B2, 1, 1, S2), dtype=jnp.float32)
    T2 = jax.random.normal(kt, (B2, 1, N, S2), dtype=jnp.float32)
    out2 = jax.block_until_ready(
        corr_layer_m1(X2.reshape(B2, S2), T2.reshape(B2, N, S2), batch_block=8)
    ).reshape(B2, 1, 1, N)
    ref2 = _reference(X2, T2)
    assert jnp.allclose(out2, ref2, atol=2e-5, rtol=2e-5), "partial-block mismatch"

    # 3) bf16 inputs (halves the dominant T read); compute stays f32 in-kernel,
    #    but inputs/outputs are bf16-quantized -> loose tolerance.
    Xb, Tb = X.astype(jnp.bfloat16), T.astype(jnp.bfloat16)
    outb = jax.block_until_ready(corr_layer(Xb, Tb))
    refb = _reference(Xb.astype(jnp.float32), Tb.astype(jnp.float32))
    assert jnp.allclose(outb.astype(jnp.float32), refb, atol=3e-2, rtol=3e-2), \
        "bf16 mismatch vs reference"

    # 4) N not a multiple of 8 -> lane-reduction fallback kernel.
    B4, N4 = 4, 12
    X4 = jax.random.normal(kx, (B4, 1, 1, S), dtype=jnp.float32)
    T4 = jax.random.normal(kt, (B4, 1, N4, S), dtype=jnp.float32)
    out4 = jax.block_until_ready(corr_layer(X4, T4))
    ref4 = _reference(X4, T4)
    assert jnp.allclose(out4, ref4, atol=2e-5, rtol=2e-5), "fallback mismatch"

    print("KERNEL_OK")
</pallas_src>

<mosaic_0001>
module attributes {stable_mosaic.version = 11 : i64} {
  func.func @_corr_kernel_mxu(%arg0: i32, %arg1: memref<2x128xf32, #tpu.memory_space<vmem>>, %arg2: memref<2x8x128xf32, #tpu.memory_space<vmem>>, %arg3: memref<16x1xf32, #tpu.memory_space<vmem>>) attributes {dimension_semantics = [#tpu.dimension_semantics<parallel>], iteration_bounds = array<i64: 1>, scalar_prefetch = 0 : i64, scratch_operands = 0 : i64, tpu.core_type = #tpu.core_type<tc>, window_params = [{transform_indices = @transform_0, window_bounds = array<i64: 2, 128>}, {transform_indices = @transform_1, window_bounds = array<i64: 2, 8, 128>}, {transform_indices = @transform_2, window_bounds = array<i64: 16, 1>}]} {
    %c0 = arith.constant 0 : index
    %c0_0 = arith.constant 0 : index
    %0 = vector.load %arg1[%c0, %c0_0] : memref<2x128xf32, #tpu.memory_space<vmem>>, vector<2x128xf32>
    %c0_1 = arith.constant 0 : index
    %c0_2 = arith.constant 0 : index
    %c0_3 = arith.constant 0 : index
    %1 = vector.load %arg2[%c0_1, %c0_2, %c0_3] : memref<2x8x128xf32, #tpu.memory_space<vmem>>, vector<2x8x128xf32>
    %cst = arith.constant 1.000000e+00 : f32
    %2 = vector.broadcast %cst : f32 to vector<128x1xf32>
    %3 = arith.mulf %0, %0 : vector<2x128xf32>
    %cst_4 = arith.constant dense<0.000000e+00> : vector<2x1xf32>
    %4 = tpu.matmul %3, %2, %cst_4 {dimension_numbers = #tpu.dot_dimension_numbers<[1], [0], [0], [1], [0, 0, 1, 1], [], []>, precision = #tpu.contract_precision<fp32>} : vector<2x128xf32>, vector<128x1xf32>, vector<2x1xf32> -> vector<2x1xf32>
    %5 = math.rsqrt %4 : vector<2x1xf32>
    %6 = vector.broadcast %5 : vector<2x1xf32> to vector<2x128xf32>
    %7 = arith.mulf %0, %6 : vector<2x128xf32>
    %8 = vector.shape_cast %7 : vector<2x128xf32> to vector<2x1x128xf32>
    %9 = vector.broadcast %8 : vector<2x1x128xf32> to vector<2x8x128xf32>
    %10 = arith.mulf %9, %1 : vector<2x8x128xf32>
    %11 = vector.shape_cast %10 : vector<2x8x128xf32> to vector<16x128xf32>
    %12 = arith.mulf %1, %1 : vector<2x8x128xf32>
    %13 = vector.shape_cast %12 : vector<2x8x128xf32> to vector<16x128xf32>
    %cst_5 = arith.constant dense<0.000000e+00> : vector<16x1xf32>
    %14 = tpu.matmul %11, %2, %cst_5 {dimension_numbers = #tpu.dot_dimension_numbers<[1], [0], [0], [1], [0, 0, 1, 1], [], []>, precision = #tpu.contract_precision<fp32>} : vector<16x128xf32>, vector<128x1xf32>, vector<16x1xf32> -> vector<16x1xf32>
    %cst_6 = arith.constant dense<0.000000e+00> : vector<16x1xf32>
    %15 = tpu.matmul %13, %2, %cst_6 {dimension_numbers = #tpu.dot_dimension_numbers<[1], [0], [0], [1], [0, 0, 1, 1], [], []>, precision = #tpu.contract_precision<fp32>} : vector<16x128xf32>, vector<128x1xf32>, vector<16x1xf32> -> vector<16x1xf32>
    %16 = math.rsqrt %15 : vector<16x1xf32>
    %17 = arith.mulf %14, %16 : vector<16x1xf32>
    %c0_7 = arith.constant 0 : index
    %c0_8 = arith.constant 0 : index
    %18 = vector.load %arg3[%c0_7, %c0_8] : memref<16x1xf32, #tpu.memory_space<vmem>>, vector<16x1xf32>
    tpu.vector_store %arg3[%c0_7, %c0_8], %17 {strides = array<i32>} : memref<16x1xf32, #tpu.memory_space<vmem>>, vector<16x1xf32>,
    return
  }
  func.func @transform_0(%arg0: i32) -> (i32, i32) {
    %c0_i32 = arith.constant 0 : i32
    %c0_i32_0 = arith.constant 0 : i32
    return %arg0, %c0_i32 : i32, i32
  }
  func.func @transform_1(%arg0: i32) -> (i32, i32, i32) {
    %c0_i32 = arith.constant 0 : i32
    %c0_i32_0 = arith.constant 0 : i32
    %c0_i32_1 = arith.constant 0 : i32
    return %arg0, %c0_i32, %c0_i32_0 : i32, i32, i32
  }
  func.func @transform_2(%arg0: i32) -> (i32, i32) {
    %c0_i32 = arith.constant 0 : i32
    %c0_i32_0 = arith.constant 0 : i32
    return %arg0, %c0_i32 : i32, i32
  }
}

</mosaic_0001>

<bundles_post_ra>
// kernel: tpu_custom_call.1
= control target key start
LH: loop header
LB: loop body
LE: loop exit
PB: predicated region body
PF: predicated region fallthrough
CT: control target
= control target key end

     0   :  { %7 = vsyncpa [#allocation3], 0  ;;  %s852_s0 = inlined_call_operand.hbm [shape: f32[2,128], index: 0, kind: input, shape index: {}]   ;;  %s853_s1 = inlined_call_operand.hbm [shape: f32[2,8,128], index: 1, kind: input, shape index: {}]   ;;  %s854_s2 = inlined_call_operand.vmem [shape: f32[16,1], index: 2, kind: output, shape index: {}]  }
   0x1   :  { %s14_s11 = sshll.u32 %s852_s0, 4  ;;  %s15_s11 = int_to_ptr.hbm [resolvable:$true] %s14_s11 }
   0x2   :  { %8 = vsyncpa [#allocation5], 0  ;;  %s630_s12 = smov [#allocation2]   ;;  %s24_s16 = sshll.u32 %s853_s1, 4  ;;  %s25_s16 = int_to_ptr.hbm [resolvable:$true] %s24_s16 }
   0x3   :  { %s16_s13 = sshll.u32 %s630_s12, 4  ;;  %s631_s17 = smov [#allocation4]   ;;  %s17_s13 = int_to_ptr.vmem [resolvable:$true] %s16_s13 }
   0x4   :  { %19 = dma.hbm_to_vmem [thread:$0]  %s15_s11, 32, %s17_s13, [#allocation3]  }
   0x5   :  { %s26_s18 = sshll.u32 %s631_s17, 4  ;;  %s632_s19 = smov 128   ;;  %s27_s18 = int_to_ptr.vmem [resolvable:$true] %s26_s18 }
   0x6   :  { %s633_s20 = smov 8  }
   0x7   :  { %32 = dma.hbm_to_vmem [thread:$0]  %s25_s16, 256, %s27_s18, [#allocation5], %s632_s19, %s632_s19, %s633_s20  }
   0x8   :  { %626 = dma.done.wait [#allocation3], 32  }
   0x9   :  { %627 = vsyncadd [#allocation3], 4294967264 }
   0xa   :  { %628 = dma.done.wait [#allocation5], 256  }
   0xb   :  { %629 = vsyncadd [#allocation5], 4294967040  ;;  %v634_v0 = vmov 1.0   ;;  %v635_v1 = vmov 0.0   ;;  %v671_v2 = vld [vmem:[#allocation2] sm:$0x3] }
   0xc   :  { %45 = vmatpush.msra.mxu0 %v634_v0  ;;  %113 = vmatpush.msra.mxu3 %v634_v0  ;;  %v44_v3 = vmul.f32 %v671_v2, %v671_v2  ;;  %v636_v9 = vmov 0   ;;  %v42_v30 = vld [vmem:[#allocation4] sm:$0xff]  ;;  %v43_v33 = vld [vmem:[#allocation4 + $0x8] sm:$0xff]  ;;  %vm554_vm6 = vcmask 7168  }
   0xd   :  { %85 = vmatpush.msra.mxu2 %v635_v1  ;;  %151 = vmatpush.msra.mxu1 %v635_v1  ;;  %v202_v40 = vmul.f32 %v42_v30, %v42_v30  ;;  %v203_v49 = vmul.f32 %v43_v33, %v43_v33 }
   0xe   :  { %46 = vmatpush.msra.mxu0 %v634_v0  ;;  %114 = vmatpush.msra.mxu3 %v634_v0  ;;  %v678_v4 = vand.u32 4294901760, %v44_v3 }
   0xf   :  { %106 = vmatpush.msrb.mxu2 %v635_v1  ;;  %204 = vmatpush.msrb.mxu1 %v634_v0  ;;  %v784_v46 = vand.u32 4294901760, %v202_v40  ;;  %v392_v52 = vand.u32 4294901760, %v203_v49 }
  0x10   :  { %47 = vmatpush.msra.mxu0 %v634_v0  ;;  %115 = vmatpush.msra.mxu3 %v634_v0  ;;  %v62_v5 = vsub.f32 %v44_v3, %v678_v4 }
  0x11   :  { %205 = vmatpush.msrb.mxu1 %v634_v0  ;;  %87 = vmatmul.f32.vlgmr.msra.gmra.mxu2 %v678_v4  ;;  %v789_v47 = vsub.f32 %v202_v40, %v784_v46  ;;  %v393_v54 = vsub.f32 %v203_v49, %v392_v52 }
  0x12   :  { %48 = vmatpush.msra.mxu0 %v634_v0  ;;  %116 = vmatpush.msra.mxu3 %v634_v0  ;;  %v63_v6 = vand.u32 4294901760, %v62_v5 }
  0x13   :  { %206 = vmatpush.msrb.mxu1 %v634_v0  ;;  %157 = vmatpush.msra.mxu2 %v634_v0  ;;  %v386_v50 = vand.u32 4294901760, %v789_v47  ;;  %v394_v56 = vand.u32 4294901760, %v393_v54 }
  0x14   :  { %49 = vmatpush.msra.mxu0 %v634_v0  ;;  %117 = vmatpush.msra.mxu3 %v634_v0  ;;  %v64_v7 = vsub.f32 %v62_v5, %v63_v6 }
  0x15   :  { %207 = vmatpush.msrb.mxu1 %v634_v0  ;;  %158 = vmatpush.msra.mxu2 %v634_v0  ;;  %v387_v53 = vsub.f32 %v789_v47, %v386_v50  ;;  %v395_v57 = vsub.f32 %v393_v54, %v394_v56 }
  0x16   :  { %50 = vmatpush.msra.mxu0 %v634_v0  ;;  %118 = vmatpush.msra.mxu3 %v634_v0  ;;  %v65_v8 = vand.u32 4294901760, %v64_v7 }
  0x17   :  { %153 = vmatmul.f32.vlgmr.msra.gmra.mxu1 %v678_v4  ;;  %159 = vmatpush.msra.mxu2 %v634_v0  ;;  %v388_v55 = vand.u32 4294901760, %v387_v53  ;;  %v396_v58 = vand.u32 4294901760, %v395_v57 }
  0x18   :  { %51 = vmatpush.msra.mxu0 %v634_v0  ;;  %119 = vmatpush.msra.mxu3 %v634_v0 }
  0x19   :  { %208 = vmatpush.msrb.mxu1 %v634_v0  ;;  %160 = vmatpush.msra.mxu2 %v634_v0 }
  0x1a   :  { %52 = vmatpush.msra.mxu0 %v634_v0  ;;  %120 = vmatpush.msra.mxu3 %v634_v0 }
  0x1b   :  { %209 = vmatpush.msrb.mxu1 %v634_v0  ;;  %109 = vmatmul.f32.vlgmr.msrb.gmra.mxu2 %v62_v5 }
  0x1c   :  { %53 = vmatpush.msra.mxu0 %v634_v0  ;;  %121 = vmatpush.msra.mxu3 %v634_v0 }
  0x1d   :  { %210 = vmatpush.msrb.mxu1 %v634_v0  ;;  %161 = vmatpush.msra.mxu2 %v634_v0 }
  0x1e   :  { %54 = vmatpush.msra.mxu0 %v634_v0  ;;  %122 = vmatpush.msra.mxu3 %v634_v0 }
  0x1f   :  { %211 = vmatpush.msrb.mxu1 %v634_v0  ;;  %162 = vmatpush.msra.mxu2 %v634_v0 }
  0x20   :  { %55 = vmatpush.msra.mxu0 %v634_v0  ;;  %123 = vmatpush.msra.mxu3 %v634_v0 }
  0x21   :  { %212 = vmatpush.msrb.mxu1 %v634_v0  ;;  %163 = vmatpush.msra.mxu2 %v634_v0 }
  0x22   :  { %56 = vmatpush.msra.mxu0 %v634_v0  ;;  %124 = vmatpush.msra.mxu3 %v634_v0 }
  0x23   :  { %213 = vmatpush.msrb.mxu1 %v634_v0  ;;  %164 = vmatpush.msra.mxu2 %v634_v0 }
  0x24   :  { %57 = vmatpush.msra.mxu0 %v634_v0  ;;  %125 = vmatpush.msra.mxu3 %v634_v0 }
  0x25   :  { %214 = vmatpush.msrb.mxu1 %v634_v0  ;;  %165 = vmatpush.msra.mxu2 %v634_v0 }
  0x26   :  { %58 = vmatpush.msra.mxu0 %v634_v0  ;;  %126 = vmatpush.msra.mxu3 %v634_v0 }
  0x27   :  { %215 = vmatpush.msrb.mxu1 %v634_v0  ;;  %166 = vmatpush.msra.mxu2 %v634_v0 }
  0x28   :  { %59 = vmatpush.msra.mxu0 %v634_v0  ;;  %127 = vmatpush.msra.mxu3 %v634_v0 }
  0x29   :  { %167 = vmatpush.msra.mxu2 %v634_v0  ;;  %216 = vmatpush.msrb.mxu1 %v634_v0 }
  0x2a   :  { %60 = vmatpush.msra.mxu0 %v634_v0  ;;  %128 = vmatpush.msra.mxu3 %v634_v0 }
  0x2b   :  { %66 = vmatmul.f32.vlgmr.msra.gmra.mxu0 %v65_v8  ;;  %132 = vmatmul.f32.vlgmr.msra.gmra.mxu3 %v63_v6 }
  0x2c   :  { %563 = vmatpush.msrb.mxu3 %v635_v1  ;;  %168 = vmatpush.msra.mxu2 %v634_v0 }
  0x2d   :  { %252 = vmatpush.msrb.mxu0 %v635_v1  ;;  %217 = vmatpush.msrb.mxu1 %v634_v0 }
  0x2e   :  { %277 = vmatpush.msra.mxu3 %v635_v1  ;;  %169 = vmatpush.msra.mxu2 %v634_v0 }
  0x2f   :  { %333 = vmatpush.msra.mxu0 %v635_v1  ;;  %218 = vmatpush.msrb.mxu1 %v634_v0 }
  0x30   :  { %170 = vmatpush.msra.mxu2 %v634_v0  ;;  %571 = vset.pattern.permute.xlu0 %v636_v9 }
  0x31   :  { %219 = vmatpush.msrb.mxu1 %v634_v0 }
  0x32   :  { %171 = vmatpush.msra.mxu2 %v634_v0 }
  0x33   :  { %368 = vmatpush.msra.mxu1 %v634_v0 }
  0x34   :  { %172 = vmatpush.msra.mxu2 %v634_v0 }
  0x35   :  { %369 = vmatpush.msra.mxu1 %v634_v0  ;;  %174 = vmatmul.f32.vlgmr.msra.gmra.mxu2 %v678_v4 }
  0x36   :  { %289 = vmatpush.msrb.mxu2 %v634_v0 }
  0x37   :  { %370 = vmatpush.msra.mxu1 %v634_v0 }
  0x38   :  { %290 = vmatpush.msrb.mxu2 %v634_v0 }
  0x39   :  { %371 = vmatpush.msra.mxu1 %v634_v0 }
  0x3a   :  { %291 = vmatpush.msrb.mxu2 %v634_v0 }
  0x3b   :  { %372 = vmatpush.msra.mxu1 %v634_v0 }
  0x3c   :  { %292 = vmatpush.msrb.mxu2 %v634_v0 }
  0x3d   :  { %373 = vmatpush.msra.mxu1 %v634_v0 }
  0x3e   :  { %293 = vmatpush.msrb.mxu2 %v634_v0 }
  0x3f   :  { %374 = vmatpush.msra.mxu1 %v634_v0 }
  0x40   :  { %294 = vmatpush.msrb.mxu2 %v634_v0 }
  0x41   :  { %375 = vmatpush.msra.mxu1 %v634_v0 }
  0x42   :  { %295 = vmatpush.msrb.mxu2 %v634_v0 }
  0x43   :  { %376 = vmatpush.msra.mxu1 %v634_v0 }
  0x44   :  { %296 = vmatpush.msrb.mxu2 %v634_v0 }
  0x45   :  { %377 = vmatpush.msra.mxu1 %v634_v0 }
  0x46   :  { %297 = vmatpush.msrb.mxu2 %v634_v0 }
  0x47   :  { %378 = vmatpush.msra.mxu1 %v634_v0 }
  0x48   :  { %298 = vmatpush.msrb.mxu2 %v634_v0 }
  0x49   :  { %379 = vmatpush.msra.mxu1 %v634_v0 }
  0x4a   :  { %299 = vmatpush.msrb.mxu2 %v634_v0 }
  0x4b   :  { %380 = vmatpush.msra.mxu1 %v634_v0 }
  0x4c   :  { %300 = vmatpush.msrb.mxu2 %v634_v0 }
  0x4d   :  { %381 = vmatpush.msra.mxu1 %v634_v0 }
  0x4e   :  { %301 = vmatpush.msrb.mxu2 %v634_v0 }
  0x4f   :  { %382 = vmatpush.msra.mxu1 %v634_v0 }
  0x50   :  { %302 = vmatpush.msrb.mxu2 %v634_v0 }
  0x51   :  { %383 = vmatpush.msra.mxu1 %v634_v0 }
  0x52   :  { %303 = vmatpush.msrb.mxu2 %v634_v0 }
  0x54   :  { %304 = vmatpush.msrb.mxu2 %v634_v0 }
  0x56   :  { %441 = vmatpush.msra.mxu2 %v635_v1 }
  0x94   :  { %v88_v10 = vpop.f32.mrf.mxu2  ;;  %v154_v17 = vpop.f32.mrf.mxu1 }
  0x9e   :  { %v110_v13 = vpop.f32.mrf.mxu2 }
  0xa8   :  { %v67_v11 = vpop.f32.mrf.mxu0 }
  0xa9   :  { %v89_v12 = vadd.f32 %v88_v10, %v67_v11 }
  0xab   :  { %v111_v15 = vadd.f32 %v110_v13, %v89_v12 }
  0xae   :  { %v133_v14 = vpop.f32.mrf.mxu3 }
  0xaf   :  { %v134_v16 = vadd.f32 %v133_v14, %v111_v15 }
  0xb1   :  { %v155_v18 = vadd.f32 %v154_v17, %v134_v16 }
  0xb8   :  { %v175_v19 = vpop.f32.mrf.mxu2 }
  0xb9   :  { %v176_v20 = vadd.f32 %v175_v19, %v155_v18 }
  0xbb   :  { %572 = vrsqrt.f32 %v176_v20  ;;  %vm184_vm1 = vweird.f32 %v176_v20 }
  0xc1   :  { %v573_v21 = vpop.eup %572 }
  0xc2   :  { %v179_v22 = vmul.f32 %v573_v21, %v176_v20  ;;  %vm185_vm0 = vweird.f32 %v573_v21 }
  0xc3   :  { %vm186_vm2 = vmor %vm184_vm1, %vm185_vm0 }
  0xc4   :  { %v180_v23 = vmul.f32 %v573_v21, %v179_v22 }
  0xc6   :  { %v181_v24 = vmul.f32 0.5, %v180_v23 }
  0xc8   :  { %v182_v25 = vsub.f32 1.5, %v181_v24 }
  0xca   :  { %v183_v26 = vmul.f32 %v573_v21, %v182_v25 }
  0xcc   :  { %v187_v27 = vsel %vm186_vm2, %v573_v21, %v183_v26 }
  0xcd   :  { %190 = vperm.xlu0 %571, %v187_v27  }
 0x13f   :  { %v191_v28 = vpop.permute.xlu0 %190 }
 0x140   :  { %v193_v29 = vmul.f32 %v191_v28, %v671_v2 }
 0x142   :  { %v195_v31 = vrot.slane %v193_v29, 1  ;;  %v196_v32 = vperm.slane %v193_v29, 0 }
 0x144   :  { %v197_v34 = vperm.slane %v195_v31, 0  ;;  %v200_v35 = vmul.f32 %v196_v32, %v42_v30 }
 0x146   :  { %v201_v36 = vmul.f32 %v197_v34, %v43_v33  ;;  %v773_v37 = vand.u32 4294901760, %v200_v35 }
 0x148   :  { %v221_v38 = vsub.f32 %v200_v35, %v773_v37  ;;  %v776_v39 = vand.u32 4294901760, %v201_v36  ;;  %254 = vmatmul.f32.vlgmr.msrb.gmra.mxu0 %v773_v37 }
 0x149   :  { %416 = vmatpush.msrb.mxu0 %v635_v1 }
 0x14a   :  { %258 = vmatmul.f32.vlgmr.msrb.gmra.mxu3 %v776_v39  ;;  %v222_v41 = vand.u32 4294901760, %v221_v38  ;;  %v229_v42 = vsub.f32 %v201_v36, %v776_v39 }
 0x14b   :  { %343 = vmatpush.msrb.mxu3 %v634_v0 }
 0x14c   :  { %308 = vmatmul.f32.vlgmr.msrb.gmra.mxu2 %v222_v41  ;;  %v223_v43 = vsub.f32 %v221_v38, %v222_v41  ;;  %v230_v45 = vand.u32 4294901760, %v229_v42 }
 0x14d   :  { %344 = vmatpush.msrb.mxu3 %v634_v0 }
 0x14e   :  { %v224_v44 = vand.u32 4294901760, %v223_v43  ;;  %v231_v48 = vsub.f32 %v229_v42, %v230_v45 }
 0x14f   :  { %345 = vmatpush.msrb.mxu3 %v634_v0 }
 0x150   :  { %225 = vmatmul.f32.vlgmr.msrb.gmra.mxu1 %v224_v44  ;;  %335 = vmatmul.f32.vlgmr.msra.gmra.mxu0 %v773_v37  ;;  %v232_v51 = vand.u32 4294901760, %v231_v48 }
 0x151   :  { %346 = vmatpush.msrb.mxu3 %v634_v0  ;;  %453 = vmatpush.msra.mxu0 %v634_v0 }
 0x152   :  { %280 = vmatmul.f32.vlgmr.msra.gmra.mxu3 %v221_v38  ;;  %507 = vmatpush.msrb.mxu1 %v634_v0 }
 0x153   :  { %347 = vmatpush.msrb.mxu3 %v634_v0  ;;  %454 = vmatpush.msra.mxu0 %v634_v0 }
 0x154   :  { %314 = vmatmul.f32.gmra.mxu2 %v230_v45  ;;  %508 = vmatpush.msrb.mxu1 %v634_v0 }
 0x155   :  { %348 = vmatpush.msrb.mxu3 %v634_v0  ;;  %455 = vmatpush.msra.mxu0 %v634_v0 }
 0x156   :  { %509 = vmatpush.msrb.mxu1 %v634_v0 }
 0x157   :  { %349 = vmatpush.msrb.mxu3 %v634_v0  ;;  %456 = vmatpush.msra.mxu0 %v634_v0 }
 0x158   :  { %233 = vmatmul.f32.gmra.mxu1 %v232_v51  ;;  %339 = vmatmul.f32.gmra.mxu0 %v776_v39 }
 0x159   :  { %350 = vmatpush.msrb.mxu3 %v634_v0  ;;  %457 = vmatpush.msra.mxu0 %v634_v0 }
 0x15a   :  { %285 = vmatmul.f32.gmra.mxu3 %v229_v42  ;;  %510 = vmatpush.msrb.mxu1 %v634_v0 }
 0x15b   :  { %351 = vmatpush.msrb.mxu3 %v634_v0  ;;  %458 = vmatpush.msra.mxu0 %v634_v0 }
 0x15c   :  { %444 = vmatmul.f32.vlgmr.msra.gmra.mxu2 %v789_v47  ;;  %511 = vmatpush.msrb.mxu1 %v634_v0 }
 0x15d   :  { %352 = vmatpush.msrb.mxu3 %v634_v0  ;;  %459 = vmatpush.msra.mxu0 %v634_v0 }
 0x15e   :  { %512 = vmatpush.msrb.mxu1 %v634_v0 }
 0x15f   :  { %353 = vmatpush.msrb.mxu3 %v634_v0  ;;  %460 = vmatpush.msra.mxu0 %v634_v0 }
 0x160   :  { %418 = vmatmul.f32.vlgmr.msrb.gmra.mxu0 %v784_v46  ;;  %389 = vmatmul.f32.vlgmr.msra.gmra.mxu1 %v388_v55 }
 0x161   :  { %354 = vmatpush.msrb.mxu3 %v634_v0  ;;  %461 = vmatpush.msra.mxu0 %v634_v0 }
 0x162   :  { %513 = vmatpush.msrb.mxu1 %v634_v0 }
 0x163   :  { %355 = vmatpush.msrb.mxu3 %v634_v0  ;;  %462 = vmatpush.msra.mxu0 %v634_v0 }
 0x164   :  { %514 = vmatpush.msrb.mxu1 %v634_v0  ;;  %449 = vmatmul.f32.gmra.mxu2 %v393_v54 }
 0x165   :  { %356 = vmatpush.msrb.mxu3 %v634_v0  ;;  %463 = vmatpush.msra.mxu0 %v634_v0 }
 0x166   :  { %515 = vmatpush.msrb.mxu1 %v634_v0 }
 0x167   :  { %357 = vmatpush.msrb.mxu3 %v634_v0  ;;  %464 = vmatpush.msra.mxu0 %v634_v0 }
 0x168   :  { %422 = vmatmul.f32.gmra.mxu0 %v392_v52  ;;  %516 = vmatpush.msrb.mxu1 %v634_v0 }
 0x169   :  { %358 = vmatpush.msrb.mxu3 %v634_v0  ;;  %465 = vmatpush.msra.mxu0 %v634_v0 }
 0x16a   :  { %360 = vmatmul.f32.vlgmr.msrb.gmra.mxu3 %v773_v37  ;;  %397 = vmatmul.f32.gmra.mxu1 %v396_v58 }
 0x16b   :  { %497 = vmatpush.msra.mxu3 %v635_v1  ;;  %466 = vmatpush.msra.mxu0 %v634_v0 }
 0x16c   :  { %517 = vmatpush.msrb.mxu1 %v634_v0 }
 0x16d   :  { %467 = vmatpush.msra.mxu0 %v634_v0 }
 0x16e   :  { %518 = vmatpush.msrb.mxu1 %v634_v0 }
 0x16f   :  { %468 = vmatpush.msra.mxu0 %v634_v0 }
 0x170   :  { %472 = vmatmul.f32.vlgmr.msra.gmra.mxu0 %v386_v50  ;;  %519 = vmatpush.msrb.mxu1 %v634_v0 }
 0x172   :  { %364 = vmatmul.f32.gmra.mxu3 %v776_v39  ;;  %520 = vmatpush.msrb.mxu1 %v634_v0 }
 0x174   :  { %521 = vmatpush.msrb.mxu1 %v634_v0 }
 0x176   :  { %522 = vmatpush.msrb.mxu1 %v634_v0 }
 0x177   :  { %524 = vmatmul.f32.vlgmr.msrb.gmra.mxu1 %v784_v46 }
 0x178   :  { %478 = vmatmul.f32.gmra.mxu0 %v394_v56 }
 0x17a   :  { %499 = vmatmul.f32.vlgmr.msra.gmra.mxu3 %v784_v46 }
 0x17f   :  { %528 = vmatmul.f32.gmra.mxu1 %v392_v52 }
 0x182   :  { %503 = vmatmul.f32.gmra.mxu3 %v392_v52 }
 0x1c5   :  { %v255_v59 = vpop.f32.mrf.mxu0 }
 0x1cd   :  { %v336_v60 = vpop.f32.mrf.mxu0  ;;  %v259_v61 = vpop.f32.mrf.mxu3 }
 0x1ce   :  { %v226_v62 = vpop.f32.mrf.mxu1 }
 0x1cf   :  { %v309_v2 = vpop.f32.mrf.mxu2  ;;  %v256_v27 = vadd.f32 %v255_v59, %v226_v62 }
 0x1d5   :  { %v340_v63 = vpop.f32.mrf.mxu0  ;;  %v281_v1 = vpop.f32.mrf.mxu3 }
 0x1d6   :  { %v234_v3 = vpop.f32.mrf.mxu1  ;;  %v282_v30 = vadd.f32 %v281_v1, %v256_v27 }
 0x1d7   :  { %v315_v7 = vpop.f32.mrf.mxu2  ;;  %v260_v36 = vadd.f32 %v259_v61, %v234_v3 }
 0x1d8   :  { %v310_v34 = vadd.f32 %v309_v2, %v282_v30 }
 0x1da   :  { %v337_v40 = vadd.f32 %v336_v60, %v310_v34 }
 0x1dd   :  { %v419_v4 = vpop.f32.mrf.mxu0  ;;  %v286_v5 = vpop.f32.mrf.mxu3 }
 0x1de   :  { %v390_v6 = vpop.f32.mrf.mxu1  ;;  %v287_v39 = vadd.f32 %v286_v5, %v260_v36 }
 0x1df   :  { %v445_v9 = vpop.f32.mrf.mxu2  ;;  %v420_v11 = vadd.f32 %v419_v4, %v390_v6 }
 0x1e0   :  { %v316_v46 = vadd.f32 %v315_v7, %v287_v39 }
 0x1e1   :  { %v446_v14 = vadd.f32 %v445_v9, %v420_v11 }
 0x1e2   :  { %v341_v50 = vadd.f32 %v340_v63, %v316_v46 }
 0x1e5   :  { %v423_v0 = vpop.f32.mrf.mxu0 }
 0x1e7   :  { %v398_v10 = vpop.f32.mrf.mxu1  ;;  %v450_v18 = vpop.f32.mrf.mxu2 }
 0x1e8   :  { %v424_v17 = vadd.f32 %v423_v0, %v398_v10 }
 0x1ea   :  { %v451_v21 = vadd.f32 %v450_v18, %v424_v17 }
 0x1ed   :  { %v361_v8 = vpop.f32.mrf.mxu3  ;;  %v473_v13 = vpop.f32.mrf.mxu0 }
 0x1ee   :  { %v474_v16 = vadd.f32 %v473_v13, %v446_v14  ;;  %v362_v43 = vadd.f32 %v361_v8, %v337_v40 }
 0x1f4   :  { %v525_v15 = vpop.f32.mrf.mxu1 }
 0x1f5   :  { %v365_v12 = vpop.f32.mrf.mxu3  ;;  %v479_v23 = vpop.f32.mrf.mxu0 }
 0x1f6   :  { %v480_v24 = vadd.f32 %v479_v23, %v451_v21  ;;  %v366_v52 = vadd.f32 %v365_v12, %v341_v50 }
 0x1fc   :  { %v529_v26 = vpop.f32.mrf.mxu1 }
 0x1fd   :  { %v500_v19 = vpop.f32.mrf.mxu3 }
 0x1fe   :  { %v501_v20 = vadd.f32 %v500_v19, %v474_v16 }
 0x200   :  { %v526_v22 = vadd.f32 %v525_v15, %v501_v20 }
 0x202   :  { %574 = vrsqrt.f32 %v526_v22  ;;  %vm538_vm4 = vweird.f32 %v526_v22 }
 0x205   :  { %v504_v25 = vpop.f32.mrf.mxu3 }
 0x206   :  { %v505_v28 = vadd.f32 %v504_v25, %v480_v24 }
 0x208   :  { %v575_v29 = vpop.eup %574  ;;  %v530_v31 = vadd.f32 %v529_v26, %v505_v28 }
 0x209   :  { %v533_v32 = vmul.f32 %v575_v29, %v526_v22  ;;  %vm539_vm3 = vweird.f32 %v575_v29 }
 0x20a   :  { %576 = vrsqrt.f32 %v530_v31  ;;  %vm540_vm5 = vmor %vm538_vm4, %vm539_vm3  ;;  %vm548_vm8 = vweird.f32 %v530_v31 }
 0x20b   :  { %v534_v33 = vmul.f32 %v575_v29, %v533_v32 }
 0x20d   :  { %v535_v35 = vmul.f32 0.5, %v534_v33 }
 0x20f   :  { %v536_v37 = vsub.f32 1.5, %v535_v35 }
 0x210   :  { %v577_v38 = vpop.eup %576 }
 0x211   :  { %v537_v41 = vmul.f32 %v575_v29, %v536_v37  ;;  %v543_v42 = vmul.f32 %v577_v38, %v530_v31  ;;  %vm549_vm7 = vweird.f32 %v577_v38 }
 0x212   :  { %vm550_vm9 = vmor %vm548_vm8, %vm549_vm7 }
 0x213   :  { %v541_v44 = vsel %vm540_vm5, %v575_v29, %v537_v41  ;;  %v544_v45 = vmul.f32 %v577_v38, %v543_v42 }
 0x214   :  { %v552_v47 = vmul.f32 %v541_v44, %v362_v43 }
 0x215   :  { %v545_v48 = vmul.f32 0.5, %v544_v45 }
 0x216   :  { %555 = vst.msk [vmem:[%s854_s2] sm:$0xff] %vm554_vm6, %v552_v47 }
 0x217   :  { %v546_v49 = vsub.f32 1.5, %v545_v48 }
 0x219   :  { %v547_v51 = vmul.f32 %v577_v38, %v546_v49 }
 0x21b   :  { %v551_v53 = vsel %vm550_vm9, %v577_v38, %v547_v51 }
 0x21c   :  { %v553_v54 = vmul.f32 %v551_v53, %v366_v52 }
 0x21e   :  { %556 = vst.msk [vmem:[%s854_s2 + $0x8] sm:$0xff] %vm554_vm6, %v553_v54 }
 0x21f   :  { %561 = vsyncpa [#allocation3], 1 }
 0x220   :  { %562 = vsyncpa [#allocation5], 1 }

</bundles_post_ra>
